<compile_context>
chip_gen: v7x
topology: tpu7x:2x2x1
jax: 0.10.0
libtpu: 0.0.40
codegen_flags: <defaults>
</compile_context>

<pallas_src>
import functools

import jax
import jax.numpy as jnp
from jax.experimental import pallas as pl
from jax.experimental.pallas import tpu as pltpu


def _conv_block(x_ref, masks_ref, w_ref, *, kh_sz, kw_sz, w_img, pad, l_out):
    """Fused ReLU + im2col conv for the whole block.

    Returns the f32 conv result of shape (C_out, nb * l_out), image-major along
    the lane axis.  One MXU matmul per call (per grid step).
    """
    nb = x_ref.shape[0]
    x = jnp.maximum(x_ref[...], 0)            # fused ReLU, (nb, C_in, Lf) bf16
    masks = masks_ref[...]                    # (kw_sz, l_out) bf16 0/1 border masks
    w2 = w_ref[...]                           # (C_out, kh*kw*C_in) bf16

    per_image = []
    for b in range(nb):                       # static unroll, nb is small
        xb = x[b]                             # (C_in, Lf)
        taps = []
        for kh in range(kh_sz):
            for kw in range(kw_sz):
                off = kh * w_img + kw         # static lane offset of this tap
                t = xb[:, off:off + l_out]    # (C_in, l_out) contiguous lane slice
                lo = pad - kw
                hi = w_img + pad - kw
                if lo > 0 or hi < w_img:      # static: this kw needs a W-border mask
                    t = t * masks[kw:kw + 1, :]
                taps.append(t)
        # TODO(synk): on v7x the MRB supports in-place accumulation; per-kh
        # matmuls would avoid this sublane-offset concat.  Keep the single-dot
        # form here (best for v5e/v6e MRF and still fine on v7x).
        per_image.append(jnp.concatenate(taps, axis=0))          # (k_tot, l_out)

    patches = (per_image[0] if nb == 1
               else jnp.concatenate(per_image, axis=1))          # (k_tot, nb*l_out)
    return jnp.dot(w2, patches, preferred_element_type=jnp.float32)


def _stats_kernel(masks_ref, x_ref, w_ref, stats_ref, *,
                  kh_sz, kw_sz, w_img, pad, l_out):
    """Pass 1: BN partial sums only (no conv-output writeback)."""
    acc = _conv_block(x_ref, masks_ref, w_ref,
                      kh_sz=kh_sz, kw_sz=kw_sz, w_img=w_img, pad=pad, l_out=l_out)
    s = jnp.sum(acc, axis=1)                  # (C_out,)
    q = jnp.sum(acc * acc, axis=1)            # (C_out,)
    # Single merged store per grid step (each step owns its own row -> "parallel"-safe).
    stats_ref[0] = jnp.concatenate([s.reshape(1, -1), q.reshape(1, -1)], axis=0)


def _apply_kernel(masks_ref, x_ref, w_ref, affine_ref, o_ref, *,
                  kh_sz, kw_sz, w_img, pad, l_out):
    """Pass 2: recompute conv and apply BN scale/shift, write final output only."""
    acc = _conv_block(x_ref, masks_ref, w_ref,
                      kh_sz=kh_sz, kw_sz=kw_sz, w_img=w_img, pad=pad, l_out=l_out)
    scale = affine_ref[:, 0:1]                # (C_out, 1) f32
    shift = affine_ref[:, 1:2]                # (C_out, 1) f32
    y = acc * scale + shift                   # (C_out, nb*l_out) f32, lane broadcast
    nb = o_ref.shape[0]
    for b in range(nb):                       # lane offsets are multiples of 128
        o_ref[b] = y[:, b * l_out:(b + 1) * l_out].astype(o_ref.dtype)


def relu_conv_bn(x_nchw, weight_oihw, gamma, beta, *, stride, padding,
                 eps=1e-5, out_dtype=jnp.float32):
    n, c_in, h, w = x_nchw.shape
    c_out, c_in_w, kh, kw = weight_oihw.shape
    assert c_in == c_in_w

    # TODO(synk): stride>1 / non-"same" padding (DARTS reduction cells) would need
    # strided tap gathers; only the stride-1 configs ReLUConvBN is used with
    # (e.g. 1x1/pad0, 3x3/pad1) are implemented here.
    if stride != 1 or 2 * padding != kw - 1 or kh != kw:
        raise NotImplementedError(
            "relu_conv_bn: requires stride=1, square kernel and 2*padding == kernel-1")

    ho = (h + 2 * padding - kh) // stride + 1
    wo = (w + 2 * padding - kw) // stride + 1
    assert wo == w and ho == h
    l_out = ho * wo
    k_tot = kh * kw * c_in
    # TODO(synk): if generalized beyond H*W % 128 == 0, pad l_out up to the next
    # multiple of 128 so stores stay unmasked / lane-dense.

    # (N, C, H, W) -> flat (N, C, H*W), bf16, with flat zero padding that makes
    # every (kh, kw) tap a contiguous slice at static offset kh*W + kw.
    flat_pad = padding * w + padding
    lf = h * w + 2 * flat_pad
    x_flat = jnp.pad(x_nchw.reshape(n, c_in, h * w).astype(jnp.bfloat16),
                     ((0, 0), (0, 0), (flat_pad, flat_pad)))

    # OIHW -> (C_out, kh*kw*C_in); row order (kh, kw, ci) matches the in-kernel patch build.
    w2 = jnp.transpose(weight_oihw, (0, 2, 3, 1)).reshape(c_out, k_tot).astype(jnp.bfloat16)

    # Precomputed W-border masks, one row per kw (hoisted out of the kernel).
    col = (jnp.arange(l_out, dtype=jnp.int32) % jnp.int32(w)).reshape(1, l_out)
    kw_idx = jnp.arange(kw, dtype=jnp.int32).reshape(kw, 1)
    lo = jnp.int32(padding) - kw_idx
    hi = jnp.int32(w + padding) - kw_idx
    masks = ((col >= lo) & (col < hi)).astype(jnp.bfloat16)       # (kw, l_out)

    # --- images-per-step (nb) selection -------------------------------------
    out_bytes = jnp.dtype(out_dtype).itemsize

    def footprint(cand):
        # Double-buffered DMA blocks (inputs + output) ...
        dma = (cand * c_in * lf * 2            # x block (bf16)
               + kw * l_out * 2                # masks
               + c_out * k_tot * 2             # weights
               + c_out * 2 * 4                 # affine / stats block
               + cand * c_out * l_out * out_bytes)
        # ... plus kernel-internal scratch (NOT double-buffered).
        scratch = (cand * c_in * lf * 2        # post-ReLU copy
                   + k_tot * cand * l_out * 2  # patch matrix (bf16)
                   + c_out * cand * l_out * 4) # f32 accumulator / BN-applied result
        return 2 * dma + scratch

    budget = 40 << 20                          # headroom under v7x's 64 MiB VMEM
    nb = 1
    for cand in range(1, n + 1):
        if n % cand:
            continue
        g_cand = n // cand
        if g_cand < 2:                         # never collapse below 2 grid steps
            break                              # (keeps both v7x TCs busy + pipelining)
        if g_cand < 4 and n >= 4:              # prefer >= 4 steps when possible
            continue
        if footprint(cand) <= budget:
            nb = cand
    g = n // nb
    vmem_limit = int(min(48 << 20, max(16 << 20, 2 * footprint(nb))))
    # -------------------------------------------------------------------------

    conv_flops = 2 * n * l_out * c_out * k_tot
    common_in_bytes = x_flat.size * 2 + w2.size * 2 + masks.size * 2

    # Pass 1: BN partial sums (sum and sum-of-squares per channel).
    stats_cost = pl.CostEstimate(
        flops=conv_flops + 3 * n * c_out * l_out,
        transcendentals=0,
        bytes_accessed=common_in_bytes + g * 2 * c_out * 4)
    kern_stats = functools.partial(_stats_kernel, kh_sz=kh, kw_sz=kw,
                                   w_img=w, pad=padding, l_out=l_out)
    stats = pl.pallas_call(
        kern_stats,
        out_shape=jax.ShapeDtypeStruct((g, 2, c_out), jnp.float32),
        grid=(g,),
        in_specs=[
            pl.BlockSpec((kw, l_out), lambda i: (0, 0)),
            pl.BlockSpec((nb, c_in, lf), lambda i: (i, 0, 0)),
            pl.BlockSpec((c_out, k_tot), lambda i: (0, 0)),
        ],
        out_specs=pl.BlockSpec((1, 2, c_out), lambda i: (i, 0, 0)),
        compiler_params=pltpu.CompilerParams(
            dimension_semantics=("parallel",), vmem_limit_bytes=vmem_limit),
        cost_estimate=stats_cost,
    )(masks, x_flat, w2)

    # BN scale/shift from the per-step partials (tiny per-channel glue in JAX).
    # f32 E[y^2]-E[y]^2 with a clamp is adequate at these magnitudes; for very
    # large N*H*W a true two-pass variance could be computed in pass 2 instead.
    count = jnp.float32(n * l_out)
    tot = jnp.sum(stats, axis=0)                       # (2, C_out)
    mean = tot[0] / count
    var = jnp.maximum(tot[1] / count - mean * mean, 0.0)
    inv_std = jax.lax.rsqrt(var + eps)
    scale = gamma.astype(jnp.float32) * inv_std
    shift = beta.astype(jnp.float32) - mean * scale
    affine = jnp.stack([scale, shift], axis=1)         # (C_out, 2) f32

    # Pass 2: recompute conv (cheap; MXU is nearly idle) and apply BN directly.
    apply_cost = pl.CostEstimate(
        flops=conv_flops + 2 * n * c_out * l_out,
        transcendentals=0,
        bytes_accessed=common_in_bytes + affine.size * 4 + n * c_out * l_out * out_bytes)
    kern_apply = functools.partial(_apply_kernel, kh_sz=kh, kw_sz=kw,
                                   w_img=w, pad=padding, l_out=l_out)
    out = pl.pallas_call(
        kern_apply,
        out_shape=jax.ShapeDtypeStruct((n, c_out, l_out), out_dtype),
        grid=(g,),
        in_specs=[
            pl.BlockSpec((kw, l_out), lambda i: (0, 0)),
            pl.BlockSpec((nb, c_in, lf), lambda i: (i, 0, 0)),
            pl.BlockSpec((c_out, k_tot), lambda i: (0, 0)),
            pl.BlockSpec((c_out, 2), lambda i: (0, 0)),
        ],
        out_specs=pl.BlockSpec((nb, c_out, l_out), lambda i: (i, 0, 0)),
        compiler_params=pltpu.CompilerParams(
            dimension_semantics=("parallel",), vmem_limit_bytes=vmem_limit),
        cost_estimate=apply_cost,
    )(masks, x_flat, w2, affine)

    return out.reshape(n, c_out, ho, wo)       # free reshape back to NCHW


def _reference(x_nchw, w_oihw, gamma, beta, stride, padding, eps=1e-5):
    xr = jnp.maximum(x_nchw.astype(jnp.float32), 0.0)
    y = jax.lax.conv_general_dilated(
        xr, w_oihw.astype(jnp.float32),
        window_strides=(stride, stride),
        padding=((padding, padding), (padding, padding)),
        dimension_numbers=("NCHW", "OIHW", "NCHW"))
    mean = jnp.mean(y, axis=(0, 2, 3), keepdims=True)
    var = jnp.mean((y - mean) ** 2, axis=(0, 2, 3), keepdims=True)
    yhat = (y - mean) / jnp.sqrt(var + eps)
    return yhat * gamma.reshape(1, -1, 1, 1) + beta.reshape(1, -1, 1, 1)


if __name__ == "__main__":
    # ReLUConvBN(C_in=4, C_out=8, kernel_size=3, stride=1, padding=1, affine=True)
    N, C_IN, H, W = 2, 4, 16, 16
    C_OUT, K, STRIDE, PAD = 8, 3, 1, 1

    key = jax.random.PRNGKey(0)
    kx, kw_ = jax.random.split(key)
    x = jax.random.normal(kx, (N, C_IN, H, W), dtype=jnp.float32)
    weight = 0.1 * jax.random.normal(kw_, (C_OUT, C_IN, K, K), dtype=jnp.float32)
    gamma = jnp.ones((C_OUT,), jnp.float32)   # BatchNorm affine defaults
    beta = jnp.zeros((C_OUT,), jnp.float32)

    out = relu_conv_bn(x, weight, gamma, beta, stride=STRIDE, padding=PAD)
    out = jax.block_until_ready(out)

    ref = _reference(x, weight, gamma, beta, STRIDE, PAD)
    assert out.shape == (N, C_OUT, H, W)
    # bf16 MXU inputs -> relaxed tolerance vs the all-f32 reference.
    max_err = float(jnp.max(jnp.abs(out - ref)))
    assert jnp.allclose(out, ref, atol=5e-2, rtol=5e-2), \
        f"mismatch vs reference (max |err|={max_err})"

    print("KERNEL_OK")
</pallas_src>

<mosaic_0001>
module attributes {stable_mosaic.version = 11 : i64} {
  func.func @_stats_kernel(%arg0: i32, %arg1: memref<3x256xbf16, #tpu.memory_space<vmem>>, %arg2: memref<1x4x290xbf16, #tpu.memory_space<vmem>>, %arg3: memref<8x36xbf16, #tpu.memory_space<vmem>>, %arg4: memref<1x2x8xf32, #tpu.memory_space<vmem>>) attributes {dimension_semantics = [#tpu.dimension_semantics<parallel>], iteration_bounds = array<i64: 2>, scalar_prefetch = 0 : i64, scratch_operands = 0 : i64, tpu.core_type = #tpu.core_type<tc>, window_params = [{pipeline_mode = #tpu.pipeline_mode<synchronous>, transform_indices = @transform_0, window_bounds = array<i64: 3, 256>}, {transform_indices = @transform_1, window_bounds = array<i64: 1, 4, 290>}, {pipeline_mode = #tpu.pipeline_mode<synchronous>, transform_indices = @transform_2, window_bounds = array<i64: 8, 36>}, {transform_indices = @transform_3, window_bounds = array<i64: 1, 2, 8>}]} {
    %c0 = arith.constant 0 : index
    %c0_0 = arith.constant 0 : index
    %c0_1 = arith.constant 0 : index
    %0 = vector.load %arg2[%c0, %c0_0, %c0_1] : memref<1x4x290xbf16, #tpu.memory_space<vmem>>, vector<1x4x290xbf16>
    %cst = arith.constant 0.000000e+00 : bf16
    %1 = vector.broadcast %cst : bf16 to vector<1x4x290xbf16>
    %2 = arith.maximumf %0, %1 : vector<1x4x290xbf16>
    %c0_2 = arith.constant 0 : index
    %c0_3 = arith.constant 0 : index
    %3 = vector.load %arg1[%c0_2, %c0_3] : memref<3x256xbf16, #tpu.memory_space<vmem>>, vector<3x256xbf16>
    %c0_4 = arith.constant 0 : index
    %c0_5 = arith.constant 0 : index
    %4 = vector.load %arg3[%c0_4, %c0_5] : memref<8x36xbf16, #tpu.memory_space<vmem>>, vector<8x36xbf16>
    %5 = vector.shape_cast %2 : vector<1x4x290xbf16> to vector<4x290xbf16>
    %6 = vector.extract_strided_slice %5 {offsets = [0, 0], sizes = [4, 256], strides = [1, 1]} : vector<4x290xbf16> to vector<4x256xbf16>
    %7 = vector.extract_strided_slice %3 {offsets = [0, 0], sizes = [1, 256], strides = [1, 1]} : vector<3x256xbf16> to vector<1x256xbf16>
    %8 = vector.broadcast %7 : vector<1x256xbf16> to vector<4x256xbf16>
    %9 = arith.mulf %6, %8 : vector<4x256xbf16>
    %10 = vector.extract_strided_slice %5 {offsets = [0, 1], sizes = [4, 256], strides = [1, 1]} : vector<4x290xbf16> to vector<4x256xbf16>
    %11 = vector.extract_strided_slice %5 {offsets = [0, 2], sizes = [4, 256], strides = [1, 1]} : vector<4x290xbf16> to vector<4x256xbf16>
    %12 = vector.extract_strided_slice %3 {offsets = [2, 0], sizes = [1, 256], strides = [1, 1]} : vector<3x256xbf16> to vector<1x256xbf16>
    %13 = vector.broadcast %12 : vector<1x256xbf16> to vector<4x256xbf16>
    %14 = arith.mulf %11, %13 : vector<4x256xbf16>
    %15 = vector.extract_strided_slice %5 {offsets = [0, 16], sizes = [4, 256], strides = [1, 1]} : vector<4x290xbf16> to vector<4x256xbf16>
    %16 = vector.extract_strided_slice %3 {offsets = [0, 0], sizes = [1, 256], strides = [1, 1]} : vector<3x256xbf16> to vector<1x256xbf16>
    %17 = vector.broadcast %16 : vector<1x256xbf16> to vector<4x256xbf16>
    %18 = arith.mulf %15, %17 : vector<4x256xbf16>
    %19 = vector.extract_strided_slice %5 {offsets = [0, 17], sizes = [4, 256], strides = [1, 1]} : vector<4x290xbf16> to vector<4x256xbf16>
    %20 = vector.extract_strided_slice %5 {offsets = [0, 18], sizes = [4, 256], strides = [1, 1]} : vector<4x290xbf16> to vector<4x256xbf16>
    %21 = vector.extract_strided_slice %3 {offsets = [2, 0], sizes = [1, 256], strides = [1, 1]} : vector<3x256xbf16> to vector<1x256xbf16>
    %22 = vector.broadcast %21 : vector<1x256xbf16> to vector<4x256xbf16>
    %23 = arith.mulf %20, %22 : vector<4x256xbf16>
    %24 = vector.extract_strided_slice %5 {offsets = [0, 32], sizes = [4, 256], strides = [1, 1]} : vector<4x290xbf16> to vector<4x256xbf16>
    %25 = vector.extract_strided_slice %3 {offsets = [0, 0], sizes = [1, 256], strides = [1, 1]} : vector<3x256xbf16> to vector<1x256xbf16>
    %26 = vector.broadcast %25 : vector<1x256xbf16> to vector<4x256xbf16>
    %27 = arith.mulf %24, %26 : vector<4x256xbf16>
    %28 = vector.extract_strided_slice %5 {offsets = [0, 33], sizes = [4, 256], strides = [1, 1]} : vector<4x290xbf16> to vector<4x256xbf16>
    %29 = vector.extract_strided_slice %5 {offsets = [0, 34], sizes = [4, 256], strides = [1, 1]} : vector<4x290xbf16> to vector<4x256xbf16>
    %30 = vector.extract_strided_slice %3 {offsets = [2, 0], sizes = [1, 256], strides = [1, 1]} : vector<3x256xbf16> to vector<1x256xbf16>
    %31 = vector.broadcast %30 : vector<1x256xbf16> to vector<4x256xbf16>
    %32 = arith.mulf %29, %31 : vector<4x256xbf16>
    %33 = tpu.concatenate %9, %10, %14, %18, %19, %23, %27, %28, %32 in 0 : vector<4x256xbf16>, vector<4x256xbf16>, vector<4x256xbf16>, vector<4x256xbf16>, vector<4x256xbf16>, vector<4x256xbf16>, vector<4x256xbf16>, vector<4x256xbf16>, vector<4x256xbf16> -> vector<36x256xbf16>
    %cst_6 = arith.constant dense<0.000000e+00> : vector<8x256xf32>
    %34 = tpu.matmul %4, %33, %cst_6 {dimension_numbers = #tpu.dot_dimension_numbers<[1], [0], [0], [1], [0, 0, 1, 1], [], []>} : vector<8x36xbf16>, vector<36x256xbf16>, vector<8x256xf32> -> vector<8x256xf32>
    %cst_7 = arith.constant dense<0.000000e+00> : vector<8xf32>
    %35 = vector.multi_reduction <add>, %34, %cst_7 [1] : vector<8x256xf32> to vector<8xf32>
    %36 = arith.mulf %34, %34 : vector<8x256xf32>
    %cst_8 = arith.constant dense<0.000000e+00> : vector<8xf32>
    %37 = vector.multi_reduction <add>, %36, %cst_8 [1] : vector<8x256xf32> to vector<8xf32>
    %38 = vector.shape_cast %35 : vector<8xf32> to vector<1x8xf32>
    %39 = vector.shape_cast %37 : vector<8xf32> to vector<1x8xf32>
    %40 = tpu.concatenate %38, %39 in 0 : vector<1x8xf32>, vector<1x8xf32> -> vector<2x8xf32>
    %c0_9 = arith.constant 0 : index
    %c0_10 = arith.constant 0 : index
    %c0_11 = arith.constant 0 : index
    %41 = vector.load %arg4[%c0_9, %c0_10, %c0_11] : memref<1x2x8xf32, #tpu.memory_space<vmem>>, vector<1x2x8xf32>
    %42 = vector.shape_cast %41 : vector<1x2x8xf32> to vector<2x8xf32>
    %43 = vector.shape_cast %40 : vector<2x8xf32> to vector<1x2x8xf32>
    tpu.vector_store %arg4[%c0_9, %c0_10, %c0_11], %43 {strides = array<i32>} : memref<1x2x8xf32, #tpu.memory_space<vmem>>, vector<1x2x8xf32>,
    return
  }
  func.func @transform_0(%arg0: i32) -> (i32, i32) {
    %c0_i32 = arith.constant 0 : i32
    %c0_i32_0 = arith.constant 0 : i32
    %c0_i32_1 = arith.constant 0 : i32
    return %c0_i32, %c0_i32_0 : i32, i32
  }
  func.func @transform_1(%arg0: i32) -> (i32, i32, i32) {
    %c0_i32 = arith.constant 0 : i32
    %c0_i32_0 = arith.constant 0 : i32
    %c0_i32_1 = arith.constant 0 : i32
    return %arg0, %c0_i32, %c0_i32_0 : i32, i32, i32
  }
  func.func @transform_2(%arg0: i32) -> (i32, i32) {
    %c0_i32 = arith.constant 0 : i32
    %c0_i32_0 = arith.constant 0 : i32
    %c0_i32_1 = arith.constant 0 : i32
    return %c0_i32, %c0_i32_0 : i32, i32
  }
  func.func @transform_3(%arg0: i32) -> (i32, i32, i32) {
    %c0_i32 = arith.constant 0 : i32
    %c0_i32_0 = arith.constant 0 : i32
    %c0_i32_1 = arith.constant 0 : i32
    return %arg0, %c0_i32, %c0_i32_0 : i32, i32, i32
  }
}

</mosaic_0001>

<bundles_post_ra>
// kernel: tpu_custom_call.1
= control target key start
LH: loop header
LB: loop body
LE: loop exit
PB: predicated region body
PF: predicated region fallthrough
CT: control target
= control target key end

     0   :  { %8 = vsyncpa [#allocation3], 0  ;;  %s1242_s0 = inlined_call_operand.hbm [shape: bf16[3,256], index: 0, kind: input, shape index: {}]   ;;  %s1243_s1 = inlined_call_operand.hbm [shape: bf16[2,4,290], index: 1, kind: input, shape index: {}]   ;;  %s1244_s2 = inlined_call_operand.vmem [shape: bf16[8,36], index: 2, kind: input, shape index: {}]   ;;  %s1245_s3 = inlined_call_operand.hbm [shape: f32[2,2,8], index: 3, kind: output, shape index: {}]  }
   0x1   :  { %9 = vsyncpa [#allocation6], 0 }
   0x2   :  { %11 = vsyncpa [#allocation6 + $0x1], 0 }
   0x3   :  { %12 = vsyncpa [#allocation4], 0 }
   0x4   :  { %14 = vsyncpa [#allocation4 + $0x1], 0  ;;  %s956_s12 = smov 0   ;;  %s958_s13 = smov 0  }
   0x5   :  { %s960_s14 = smov 0   ;;  %s962_s15 = smov 0  }
   0x6 LB: > { %s977_s16 = sadd.s32 4294967295, %s916_s15   ;;  %s698_s17 = sadd.s32 4294967294, %s916_s15   ;;  %s916_s15 = sphi %s962_s15, %s1269_s15   ;;  %s912_s14 = sphi %s960_s14, %s1268_s14   ;;  %s908_s13 = sphi %s958_s13, %s1267_s13   ;;  %s904_s12 = sphi %s956_s12, %s1266_s12  }
   0x7   : > { %p61_p0 = scmp.ne.s32.totalorder %s908_s13, %s904_s12  ;;  %p1246_p1 = scmp.eq.s32.totalorder %s977_s16, 0 }
   0x8   : > { %p112_p3 = scmp.eq.s32.totalorder %s698_s17, 1  ;;  %p699_p5 = scmp.ge.s32.totalorder %s916_s15, 1 }
   0x9   : > { %p986_p4 = por %p1246_p1, %p61_p0  ;;  %p119_p7 = scmp.lt.s32.totalorder %s916_s15, 3 }
   0xa   : > { %p991_p6 = por %p112_p3, %p61_p0  ;;  %s918_s21 = smov [#allocation2]  }
   0xb   : > { %s1249_s18 = scalar_select %p986_p4, 1, 0 }
   0xc   : > { %s1250_s19 = scalar_select %p991_p6, 1, 0 }
   0xd   : > { %p996_p8 = pnand %p699_p5, %p119_p7  ;;  %s132_s22 = sshll.u32 %s918_s21, 4  ;;  %s133_s22 = int_to_ptr.vmem [resolvable:$true] %s132_s22 }
   0xe   : > { %s1004_s23 = sadd.s32 1, %s916_s15   ;;  %s48_s27 = sadd.s32 1, %s912_s14 }
   0xf   : > { %s1251_s20 = scalar_select %p996_p8, 1, 0 }
  0x10   : > { %p724_p10 = pneg %p996_p8  ;;  %s45_s25 = ssub.s32 %s916_s15, %s1004_s23 }
  0x11   : > { %p1014_p12 = scmp.eq.s32.totalorder %s45_s25, 0  ;;  %s788_s30 = scalar_lea.hbm %s1242_s0, 64 }
  0x12   : > { %p1008_p11 = pnand %p724_p10, %p1246_p1  ;;  %p789_p0 = scmp.ne.s32.totalorder %s1242_s0, %s788_s30 }
  0x13   : > { %s1253_s26 = scalar_select %p1014_p12, 1, 0 }
  0x14   : > { %p790_p3 = pneg %p1008_p11  ;;  %p795_p10 = scmp.lt.u32.totalorder %s788_s30, %s1242_s0 }
  0x16   : > { %p791_p5 = pnand %p790_p3, %p789_p0 }
  0x18   : > { %p792_p7 = pneg %p791_p5 }
  0x1a   : > { %p797_p9 = pnand %p795_p10, %p792_p7 }
  0x1c   : > { %800 = shalt.err (!%p797_p9)
}
  0x1d   : > { %s801_s8 = scalar_lea.vmem %s133_s22, 64  ;;  %p809_p6 = scmp.lt.s32.totalorder %s133_s22, %s133_s22 }
  0x1e   : > { %p802_p1 = scmp.ne.s32.totalorder %s133_s22, %s801_s8  ;;  %p810_p4 = scmp.lt.s32.totalorder %s801_s8, %s801_s8 }
  0x20   : > { %p804_p2 = pnand %p802_p1, %p790_p3  ;;  %p811_p8 = por %p810_p4, %p809_p6 }
  0x22   : > { %p805_p13 = pneg %p804_p2 }
  0x24   : > { %p812_p12 = pnand %p811_p8, %p805_p13 }
  0x26   : > { %815 = shalt.err (!%p812_p12)
}
  0x27   : > { %727 = dma.hbm_to_vmem [thread:$0]  (!%p1008_p11), %s1242_s0, 64, %s133_s22, [#allocation3]  }
  0x28   : > { %p1254_p1 = scmp.ne.s32.totalorder %s1253_s26, 0  ;;  %p56_p2 = scmp.eq.s32.totalorder %s916_s15, 0 }
  0x29   : > { %p1255_p4 = scmp.ne.s32.totalorder %s912_s14, %s908_s13  ;;  %p1256_p6 = scmp.eq.s32.totalorder %s977_s16, 1 }
  0x2a   : > { %s1040_s11 = scalar_select %p1254_p1, %s912_s14, %s48_s27  }
  0x2b   : > { %p1048_p8 = por %p1256_p6, %p1255_p4  ;;  %p737_p9 = scmp.lt.s32.totalorder %s916_s15, 2 }
  0x2c   : > { %s146_s21 = sand.u32 1, %s912_s14   ;;  %p1258_p12 = pmov %p1255_p4 }
  0x2d   : > { %s713_s24 = smul.u32 6, %s146_s21  ;;  %s147_s4 = scalar_lea.sflag [#allocation6], %s146_s21 }
  0x2e   : > { %p57_p13 = por %p56_p2, %p1258_p12  ;;  %s714_s25 = smul.u32 96, %s916_s15 }
  0x2f   : > { %s150_s29 = scalar_lea.vmem [#allocation5], %s713_s24  ;;  %s821_s8 = scalar_lea.hbm %s1243_s1, 192 }
  0x30   : > { %p1058_p0 = pnand %p737_p9, %p57_p13  ;;  %s1065_s27 = scalar_lea.hbm %s1243_s1, %s714_s25 }
  0x31   : > { %s158_s30 = sshll.u32 %s150_s29, 4  ;;  %s816_s5 = scalar_lea.hbm %s1065_s27, 96  ;;  %s1067_s30 = int_to_ptr.vmem [resolvable:$true] %s158_s30 }
  0x32   : > { %p817_p11 = scmp.ne.s32.totalorder %s1065_s27, %s816_s5  ;;  %p818_p3 = pneg %p1058_p0 }
  0x33   : > { %p822_p10 = scmp.lt.u32.totalorder %s1065_s27, %s1243_s1  ;;  %p823_p1 = scmp.lt.u32.totalorder %s821_s8, %s816_s5 }
  0x34   : > { %p819_p5 = pnand %p818_p3, %p817_p11  ;;  %p825_p4 = scmp.lt.u32.totalorder %s816_s5, %s1065_s27 }
  0x35   : > { %p824_p2 = por %p823_p1, %p822_p10 }
  0x36   : > { %p820_p7 = pneg %p819_p5 }
  0x37   : > { %p826_p6 = por %p825_p4, %p824_p2 }
  0x39   : > { %p827_p9 = pnand %p826_p6, %p820_p7 }
  0x3b   : > { %830 = shalt.err (!%p827_p9)
}
  0x3c   : > { %s831_s21 = scalar_lea.vmem %s1067_s30, 96  ;;  %s919_s24 = smov [#allocation5]  }
  0x3d   : > { %p832_p12 = scmp.ne.s32.totalorder %s1067_s30, %s831_s21  ;;  %s836_s25 = sshll.u32 %s919_s24, 4  ;;  %s837_s25 = int_to_ptr.vmem [resolvable:$false] %s836_s25 }
  0x3e   : > { %s838_s22 = scalar_lea.vmem %s837_s25, 192  ;;  %p839_p5 = scmp.lt.s32.totalorder %s1067_s30, %s837_s25 }
  0x3f   : > { %p834_p13 = pnand %p832_p12, %p818_p3  ;;  %p840_p10 = scmp.lt.s32.totalorder %s838_s22, %s831_s21 }
  0x41   : > { %p835_p11 = pneg %p834_p13  ;;  %p841_p1 = por %p840_p10, %p839_p5 }
  0x43   : > { %p842_p2 = pnand %p841_p1, %p835_p11 }
  0x45   : > { %845 = shalt.err (!%p842_p2)
}
  0x46   : > { %731 = dma.hbm_to_vmem [thread:$0]  (!%p1058_p0), %s1065_s27, 96, %s1067_s30, %s147_s4  }
  0x47   : > { %p1260_p7 = scmp.ne.s32.totalorder %s1251_s20, 0 }
  0x48   : > { %p1261_p3 = scmp.eq.s32.totalorder (!%p1260_p7), %s977_s16, 0 }
  0x49   : > { %167 = sbr.rel (%p1260_p7) target bundleno = 746 (0x2ea), region = 32 }
  0x50   : > { %891 = dma.done.wait (%p1261_p3), [#allocation3], 64   ;;  %p1262_p4 = pmov %p1261_p3 }
  0x51   : > { %s1101_s26 = sand.u32 1, %s908_s13   ;;  %p1263_p6 = scmp.ne.s32.totalorder %s1249_s18, 0 }
  0x52   : > { %893 = vsyncadd (%p1262_p4), [#allocation3], 4294967232  ;;  %s715_s29 = smul.u32 6, %s1101_s26  ;;  %s174_s28 = scalar_lea.sflag [#allocation6], %s1101_s26 }
  0x54   : > { %s177_s5 = scalar_lea.vmem [#allocation5], %s715_s29 }
  0x55   : > { %895 = dma.done.wait (%p1263_p6), %s174_s28, 96  }
  0x56   : > { %897 = vsyncadd (%p1263_p6), %s174_s28, 4294967200  ;;  %v217_v0 = vlaneseq  ;;  %v920_v1 = vmov 0   ;;  %v921_v3 = vmov 1983009808   ;;  %v201_v7 = vld [vmem:[%s177_s5] sm:$0x3f] }
  0x57   : > { %567 = vmatprep.mubr.bf16.mxu0 %v920_v1  ;;  %v232_v4 = vunpack.c.l.s4 %v921_v3  ;;  %v706_v8 = vld.sshfl [vmem:[#allocation2] sm:$0x33 pattern:$0x76325410]  ;;  %v1114_v12 = vmax.bf16 %v920_v1, %v201_v7  ;;  %s922_s18 = smov 18   ;;  %s923_s20 = smov 2  }
  0x58   : > { %v1110_v2 = vshrl.u32 %v217_v0, 7  ;;  %v213_v9 = vcombine.high %v706_v8, %v706_v8  ;;  %v215_v10 = vpack.i.b16 %v706_v8, %v706_v8  ;;  %s924_s27 = smov 32   ;;  %s925_s30 = smov 16   ;;  %vm275_vm0 = vcmask 146432  }
  0x59   : > { %v233_v11 = vunpack.c.0.s8 %v232_v4  ;;  %v303_v21 = vcombine.low %v1114_v12, %v1114_v12  ;;  %s926_s4 = smov 34   ;;  %s927_s6 = smov 127   ;;  %v382_v27 = vcombine.high %v1114_v12, %v1114_v12  ;;  %vm261_vm1 = vcmask 15360  }
  0x5a   : > { %v242_v5 = vsub.s32 1, %v1110_v2  ;;  %v219_v6 = vsub.s32 0, %v1110_v2  ;;  %v222_v13 = vpack.i.b16 %v213_v9, %v213_v9  ;;  %s928_s7 = smov 111   ;;  %s929_s8 = smov 95   ;;  %vm282_vm2 = vcmask 261120  }
  0x5b   : > { %v1117_v16 = vsub.s32 %v233_v11, %v1110_v2  ;;  %vm268_vm3 = vcmask 130048   ;;  %s930_s9 = smov 110   ;;  %s931_s10 = smov 126   ;;  %vm289_vm4 = vcmask 277504   ;;  %vm325_vm5 = vcmask 1039360  }
  0x5c   : > { %v243_v14 = vrot.slane %v215_v10, %v242_v5  ;;  %v220_v15 = vrot.slane %v215_v10, %v219_v6  ;;  %v247_v17 = vrot.slane %v222_v13, %v242_v5  ;;  %v227_v18 = vrot.slane %v222_v13, %v219_v6  ;;  %s932_s21 = smov 96   ;;  %s933_s24 = smov 112  }
  0x5d   : > { %v1126_v24 = vrot.slane %v303_v21, %v1117_v16  ;;  %v317_v26 = vrot.slane %v1114_v12, %v1117_v16  ;;  %v389_v29 = vrot.slane %v382_v27, %v1117_v16  ;;  %s934_s25 = smov 94   ;;  %vm490_vm6 = vcmask 1041408   ;;  %s705_s28 = sshll.u32 %s1101_s26, 1 }
  0x5e   : > { %v250_v19 = vcombine.low %v243_v14, %v247_v17  ;;  %v230_v20 = vcombine.low %v220_v15, %v227_v18  ;;  %vm352_vm7 = vcmask 1031168   ;;  %vm379_vm8 = vcmask 916480   ;;  %s710_s5 = sshll.u32 %s977_s16, 5  ;;  %s603_s16 = scalar_lea.sflag [#allocation4], %s1101_s26 }
  0x5f   : > { %v318_v25 = vcombine.high %v1126_v24, %v1126_v24  ;;  %v390_v28 = vcombine.high %v317_v26, %v317_v26  ;;  %v454_v30 = vcombine.low %v317_v26, %v317_v26  ;;  %v453_v10 = vcombine.low %v1126_v24, %v1126_v24 }
  0x60   : > { %v257_v22 = vrot.slane %v250_v19, %v1117_v16  ;;  %v1123_v23 = vrot.slane %v230_v20, %v1117_v16  ;;  %vm502_vm9 = vcmask 1045504   ;;  %vm497_vm10 = vcmask 1043456  }
  0x61   : > { %vm397_vm11 = vcmask 908288   ;;  %vm423_vm12 = vcmask 900096   ;;  %vm461_vm13 = vcmask 777216   ;;  %vm450_vm14 = vcmask 785408  }
  0x62   : > { %272 = vrot.lane.b32.xlu1 %v257_v22, %s922_s18  ;;  %258 = vrot.lane.b32.xlu0 %v257_v22, %s923_s20  ;;  %vm487_vm15 = vcmask 769024   ;;  %s199_s18 = scalar_lea.vmem [#allocation7], %s705_s28 }
  0x63   : > { %s616_s20 = sshll.u32 %s199_s18, 4  ;;  %s1200_s20 = int_to_ptr.vmem [resolvable:$true] %s616_s20 }
  0x66   : > { %279 = vrot.lane.b32.xlu1 %v1123_v23, %s924_s27  ;;  %265 = vrot.lane.b32.xlu0 %v1123_v23, %s925_s30 }
  0x6a   : > { %286 = vrot.lane.b32.xlu0 %v257_v22, %s926_s4  ;;  %321 = vrot.lane.b32.xlu1 %v318_v25, %s927_s6  ;;  %s1198_s4 = scalar_lea.hbm %s1245_s3, %s710_s5 }
  0x6e   : > { %323 = vrot.lane.b32.xlu0 %v317_v26, %s927_s6  ;;  %319 = vrot.lane.b32.xlu1 %v1126_v24, %s927_s6  ;;  %s846_s6 = scalar_lea.vmem %s1200_s20, 32 }
  0x6f   : > { %p847_p0 = scmp.ne.s32.totalorder %s1200_s20, %s846_s6 }
  0x71   : > { %p848_p9 = pnand %p847_p0, %p1048_p8 }
  0x72   : > { %393 = vrot.lane.b32.xlu0 %v390_v28, %s928_s7  ;;  %395 = vrot.lane.b32.xlu1 %v389_v29, %s928_s7 }
  0x73   : > { %p849_p12 = pneg %p848_p9 }
  0x76   : > { %391 = vrot.lane.b32.xlu0 %v317_v26, %s928_s7  ;;  %457 = vrot.lane.b32.xlu1 %v1126_v24, %s929_s8  ;;  %v239_v24 = vmul.bf16 %v1123_v23, %v1114_v12  ;;  %s935_s7 = smov [#allocation7]  }
  0x78   : > { %v300_v29 = vrot.slane %v239_v24, %v1117_v16 }
  0x7a   : > { %459 = vrot.lane.b32.xlu0 %v454_v30, %s929_s8 }
  0xd4   : > { %v273_v31 = vpop.permute.xlu1 %272  ;;  %v259_v32 = vpop.permute.xlu0 %258 }
  0xd5   : > { %v274_v33 = vrot.slane %v273_v31, 6  ;;  %v260_v34 = vrot.slane %v259_v32, 6 }
  0xd7   : > { %v276_v35 = vsel %vm275_vm0, %v274_v33, %v273_v31  ;;  %v262_v36 = vsel %vm261_vm1, %v260_v34, %v259_v32  ;;  %v301_v32 = vcombine.high %v300_v29, %v300_v29  ;;  %vm525_vm0 = vcmask 293888  }
  0xd8   : > { %v278_v37 = vmul.bf16 %v276_v35, %v1114_v12  ;;  %v264_v38 = vmul.bf16 %v262_v36, %v1114_v12  ;;  %v280_v39 = vpop.permute.xlu1 %279  ;;  %v266_v40 = vpop.permute.xlu0 %265  ;;  %vm598_vm1 = vcmask 1040384  }
  0xd9   : > { %v281_v41 = vrot.slane %v280_v39, 6  ;;  %v267_v42 = vrot.slane %v266_v40, 6 }
  0xda   : > { %v415_v43 = vrot.slane %v278_v37, %v1117_v16  ;;  %v336_v44 = vrot.slane %v264_v38, %v1117_v16  ;;  %v401_v51 = vcombine.low %v278_v37, %v278_v37  ;;  %v329_v52 = vcombine.high %v264_v38, %v264_v38 }
  0xdb   : > { %v283_v45 = vsel %vm282_vm2, %v281_v41, %v280_v39  ;;  %v269_v46 = vsel %vm268_vm3, %v267_v42, %v266_v40  ;;  %vm600_vm2 = vcmask 58368  }
  0xdc   : > { %v285_v47 = vmul.bf16 %v283_v45, %v1114_v12  ;;  %v271_v48 = vmul.bf16 %v269_v46, %v1114_v12  ;;  %421 = vrot.lane.b32.xlu1 %v415_v43, %s930_s9  ;;  %348 = vrot.lane.b32.xlu0 %v336_v44, %s931_s10  ;;  %v344_v54 = vcombine.low %v336_v44, %v336_v44  ;;  %v287_v56 = vpop.permute.xlu0 %286  ;;  %v322_v15 = vpop.permute.xlu1 %321 }
  0xdd   : > { %v408_v57 = vrot.slane %v401_v51, %v1117_v16  ;;  %v343_v58 = vrot.slane %v329_v52, %v1117_v16  ;;  %v288_v59 = vrot.slane %v287_v56, 6 }
  0xde   : > { %v356_v49 = vcombine.low %v271_v48, %v271_v48  ;;  %v434_v50 = vrot.slane %v285_v47, %v1117_v16  ;;  %v370_v55 = vrot.slane %v271_v48, %v1117_v16  ;;  %v427_v61 = vcombine.high %v285_v47, %v285_v47 }
  0xdf   : > { %v345_v62 = vcombine.low %v343_v58, %v343_v58  ;;  %v290_v63 = vsel %vm289_vm4, %v288_v59, %v287_v56  ;;  %v416_v6 = vcombine.high %v408_v57, %v408_v57 }
  0xe0   : > { %446 = vrot.lane.b32.xlu0 %v434_v50, %s932_s21  ;;  %v363_v53 = vrot.slane %v356_v49, %v1117_v16  ;;  %v372_v60 = vcombine.low %v370_v55, %v370_v55  ;;  %v442_v1 = vcombine.low %v434_v50, %v434_v50  ;;  %v292_v3 = vmul.bf16 %v290_v63, %v1114_v12  ;;  %v324_v14 = vpop.permute.xlu0 %323  ;;  %v320_v18 = vpop.permute.xlu1 %319 }
  0xe1   : > { %v441_v5 = vrot.slane %v427_v61, %v1117_v16  ;;  %v327_v33 = vsel %vm325_vm5, %v322_v15, %v324_v14  ;;  %v326_v37 = vsel %vm325_vm5, %v320_v18, %v322_v15  ;;  %v586_v18 = vand.u32 127, %v217_v0 }
  0xe2   : > { %375 = vrot.lane.b32.xlu1 %v363_v53, %s933_s24  ;;  %v371_v4 = vcombine.low %v363_v53, %v363_v53  ;;  %v472_v8 = vrot.slane %v292_v3, %v1117_v16  ;;  %v465_v9 = vcombine.high %v292_v3, %v292_v3  ;;  %v496_v36 = vsel %vm490_vm6, %v301_v32, %v327_v33 }
  0xe3   : > { %v443_v7 = vcombine.low %v441_v5, %v441_v5  ;;  %v493_v41 = vsel %vm490_vm6, %v300_v29, %v326_v37 }
  0xe4   : > { %346 = vrot.lane.b32.xlu0 %v344_v54, %s931_s10  ;;  %v479_v11 = vrot.slane %v465_v9, %v1117_v16  ;;  %v480_v13 = vcombine.high %v472_v8, %v472_v8  ;;  %v394_v17 = vpop.permute.xlu0 %393  ;;  %v396_v20 = vpop.permute.xlu1 %395 }
  0xe5   : > { %v399_v47 = vsel %vm397_vm11, %v394_v17, %v396_v20 }
  0xe6   : > { %417 = vrot.lane.b32.xlu1 %v408_v57, %s930_s9 }
  0xe8   : > { %377 = vrot.lane.b32.xlu0 %v372_v60, %s933_s24  ;;  %v392_v19 = vpop.permute.xlu0 %391  ;;  %v458_v22 = vpop.permute.xlu1 %457 }
  0xe9   : > { %v398_v52 = vsel %vm397_vm11, %v392_v19, %v394_v17  ;;  %v589_v19 = vsub.s32 %v586_v18, %v1110_v2 }
  0xea   : > { %350 = vrot.lane.b32.xlu1 %v345_v62, %s931_s10 }
  0xec   : > { %444 = vrot.lane.b32.xlu0 %v442_v1, %s932_s21  ;;  %v460_v21 = vpop.permute.xlu0 %459 }
  0xed   : > { %v463_v54 = vsel %vm461_vm13, %v458_v22, %v460_v21 }
  0xee   : > { %373 = vrot.lane.b32.xlu1 %v371_v4, %s933_s24 }
  0xf0   : > { %419 = vrot.lane.b32.xlu0 %v416_v6, %s930_s9 }
  0xf2   : > { %448 = vrot.lane.b32.xlu1 %v443_v7, %s932_s21  ;;  %v204_v7 = vld [vmem:[%s1244_s2] sm:$0xf] }
  0xf4   : > { %481 = vrot.lane.b32.xlu0 %v472_v8, %s934_s25 }
  0xf6   : > { %455 = vrot.lane.b32.xlu1 %v453_v10, %s929_s8  ;;  %s850_s8 = sshll.u32 %s935_s7, 4  ;;  %s851_s8 = int_to_ptr.vmem [resolvable:$false] %s850_s8 }
  0xf7   : > { %s852_s9 = scalar_lea.vmem %s851_s8, 64  ;;  %p853_p13 = scmp.lt.s32.totalorder %s1200_s20, %s851_s8 }
  0xf8   : > { %485 = vrot.lane.b32.xlu0 %v479_v11, %s934_s25  ;;  %p854_p11 = scmp.lt.s32.totalorder %s852_s9, %s846_s6 }
  0xfa   : > { %483 = vrot.lane.b32.xlu1 %v480_v13, %s934_s25  ;;  %p855_p5 = por %p854_p11, %p853_p13 }
  0xfc   : > { %p856_p10 = pnand %p855_p5, %p849_p12 }
 0x14e   : > { %v349_v25 = vpop.permute.xlu0 %348  ;;  %v422_v26 = vpop.permute.xlu1 %421 }
 0x152   : > { %v447_v27 = vpop.permute.xlu0 %446 }
 0x154   : > { %v376_v28 = vpop.permute.xlu1 %375 }
 0x156   : > { %v347_v30 = vpop.permute.xlu0 %346 }
 0x157   : > { %v353_v12 = vsel %vm352_vm7, %v347_v30, %v349_v25 }
 0x158   : > { %v418_v31 = vpop.permute.xlu1 %417  ;;  %v499_v44 = vsel %vm497_vm10, %v493_v41, %v353_v12 }
 0x15a   : > { %v378_v34 = vpop.permute.xlu0 %377 }
 0x15b   : > { %v381_v23 = vsel %vm379_vm8, %v376_v28, %v378_v34 }
 0x15c   : > { %v351_v35 = vpop.permute.xlu1 %350 }
 0x15d   : > { %v354_v38 = vsel %vm352_vm7, %v349_v25, %v351_v35 }
 0x15e   : > { %v445_v16 = vpop.permute.xlu0 %444  ;;  %v501_v39 = vsel %vm497_vm10, %v496_v36, %v354_v38 }
 0x15f   : > { %v507_v40 = vsel %vm502_vm9, %v501_v39, %v381_v23  ;;  %v451_v59 = vsel %vm450_vm14, %v445_v16, %v447_v27 }
 0x160   : > { %v374_v42 = vpop.permute.xlu1 %373  ;;  %535 = vmatprep.subr.bf16.mxu0 %v507_v40 }
 0x161   : > { %v380_v43 = vsel %vm379_vm8, %v374_v42, %v376_v28 }
 0x162   : > { %v420_v45 = vpop.permute.xlu0 %419  ;;  %v504_v46 = vsel %vm502_vm9, %v499_v44, %v380_v43 }
 0x163   : > { %v424_v48 = vsel %vm423_vm12, %v418_v31, %v420_v45  ;;  %v425_v49 = vsel %vm423_vm12, %v420_v45, %v422_v26  ;;  %536 = vmatpush1.bf16.msra.mxu0 %v504_v46 }
 0x164   : > { %v514_v50 = vsel %vm490_vm6, %v399_v47, %v425_v49  ;;  %v449_v51 = vpop.permute.xlu1 %448  ;;  %v511_v55 = vsel %vm490_vm6, %v398_v52, %v424_v48 }
 0x165   : > { %v452_v53 = vsel %vm450_vm14, %v447_v27, %v449_v51  ;;  %v516_v62 = vsel %vm497_vm10, %v511_v55, %v451_v59 }
 0x166   : > { %v482_v56 = vpop.permute.xlu0 %481  ;;  %v518_v57 = vsel %vm497_vm10, %v514_v50, %v452_v53 }
 0x167   : > { %v523_v58 = vsel %vm502_vm9, %v518_v57, %v463_v54 }
 0x168   : > { %v456_v60 = vpop.permute.xlu1 %455  ;;  %537 = vmatprep.subr.bf16.mxu0 %v523_v58 }
 0x169   : > { %v462_v61 = vsel %vm461_vm13, %v456_v60, %v458_v22 }
 0x16a   : > { %v520_v63 = vsel %vm502_vm9, %v516_v62, %v462_v61  ;;  %v486_v1 = vpop.permute.xlu0 %485 }
 0x16b   : > { %538 = vmatpush1.bf16.msra.mxu0 %v520_v63 }
 0x16c   : > { %v484_v3 = vpop.permute.xlu1 %483 }
 0x16d   : > { %v488_v4 = vsel %vm487_vm15, %v482_v56, %v484_v3  ;;  %v489_v5 = vsel %vm487_vm15, %v484_v3, %v486_v1 }
 0x16e   : > { %707 = vmatprep.subr.msk.bf16.mxu0 %vm490_vm6, %v489_v5  ;;  %v530_v6 = vsel %vm490_vm6, %v488_v4, 0 }
 0x16f   : > { %540 = vmatpush1.bf16.msra.mxu0 %v530_v6 }
 0x172   : > { %708 = vmatmul.mubr.msk.bf16.vlgmr.msra.gmra.mrb[0].mxu0 %vm525_vm0, %v204_v7 }
 0x245   : > { %v569_v8 = vpop.f32.mrb[0].mxu0 }
 0x246   : > { %v579_v9 = vmul.f32 %v569_v8, %v569_v8  ;;  %v571_v10 = vpop.f32.mrb[1].mxu0 }
 0x247   : > { %v580_v11 = vmul.f32 %v571_v10, %v571_v10  ;;  %v573_v13 = vpop.f32.mrb[2].mxu0  ;;  %v576_v14 = vadd.f32 %v571_v10, %v569_v8 }
 0x248   : > { %v574_v15 = vpop.f32.mrb[3].mxu0 }
 0x249   : > { %577 = vadd.xlane.f32.xlu1 %v576_v14  ;;  %v581_v17 = vadd.f32 %v580_v11, %v579_v9 }
 0x24b   : > { %582 = vadd.xlane.f32.xlu0 %v581_v17 }
 0x2d6   : > { %v578_v20 = vpop.xlane.xlu1 %577 }
 0x2d7   : > { %v590_v22 = vrot.slane %v578_v20, %v589_v19 }
 0x2d8   : > { %v583_v21 = vpop.xlane.xlu0 %582 }
 0x2d9   : > { %v596_v25 = vrot.slane %v583_v21, %v589_v19 }
 0x2db   : > { %v599_v0 = vsel %vm598_vm1, %v590_v22, %v596_v25 }
 0x2dc   : > { %601 = vst.msk [vmem:[%s199_s18] sm:$0x3] %vm600_vm2, %v599_v0 }
 0x2dd   : > { %859 = shalt.err (!%p856_p10)
}
 0x2de   : > { %s860_s26 = scalar_lea.hbm %s1198_s4, 32  ;;  %s864_s24 = scalar_lea.hbm %s1245_s3, 64 }
 0x2df   : > { %p861_p1 = scmp.ne.s32.totalorder %s1198_s4, %s860_s26  ;;  %p865_p3 = scmp.lt.u32.totalorder %s1198_s4, %s1245_s3 }
 0x2e0   : > { %p866_p4 = scmp.lt.u32.totalorder %s864_s24, %s860_s26  ;;  %p868_p0 = scmp.lt.u32.totalorder %s860_s26, %s1198_s4 }
 0x2e1   : > { %p862_p2 = pnand %p861_p1, %p1048_p8 }
 0x2e2   : > { %p867_p6 = por %p866_p4, %p865_p3 }
 0x2e3   : > { %p863_p7 = pneg %p862_p2 }
 0x2e4   : > { %p869_p9 = por %p868_p0, %p867_p6 }
 0x2e6   : > { %p870_p12 = pnand %p869_p9, %p863_p7 }
 0x2e8   : > { %873 = shalt.err (!%p870_p12)
}
 0x2e9   : > { %722 = dma.vmem_to_hbm [thread:$0]  (%p1048_p8), %s1200_s20, 32, %s1198_s4, %s603_s16  }
 0x2ea PF: > { %s628_s29 = sand.u32 1, %s904_s12   ;;  %p1264_p13 = scmp.ne.s32.totalorder %s1250_s19, 0 }
 0x2eb   : > { %p1265_p11 = scmp.ge.s32.totalorder %s916_s15, 2  ;;  %s629_s28 = scalar_lea.sflag [#allocation4], %s628_s29 }
 0x2ed   : > { %p733_p5 = pnand %p1265_p11, %p1264_p13 }
 0x2ef   : > { %899 = dma.done.wait (!%p733_p5), %s629_s28, 32  }
 0x2f0   : > { %901 = vsyncadd (!%p733_p5), %s629_s28, 4294967264  ;;  %p17_p10 = scmp.ge.s32.totalorder %s1004_s23, 4   ;;  %s1266_s12 = smov %s908_s13 }
 0x2f1   : > { %s1267_s13 = smov %s912_s14  ;;  %s1268_s14 = smov %s1040_s11 }
 0x2f2   : > { %s1269_s15 = smov %s1004_s23  ;;  %19 = sbr.rel (!%p17_p10) target bundleno = 6 (0x6), region = 82 }
 0x2f9   :  { %634 = vsyncpa [#allocation3], 1 }
 0x2fa   :  { %636 = vsyncpa [#allocation3 + $0x1], 1 }
 0x2fb   :  { %637 = vsyncpa [#allocation6], 1 }
 0x2fc   :  { %639 = vsyncpa [#allocation6 + $0x1], 1 }
 0x2fd   :  { %640 = vsyncpa [#allocation4], 1 }
 0x2fe   :  { %642 = vsyncpa [#allocation4 + $0x1], 1 }

</bundles_post_ra>
